<compile_context>
chip_gen: v5e
topology: v5e:2x2
jax: 0.10.0
libtpu: 0.0.40
codegen_flags: <defaults>
</compile_context>

<pallas_src>
import functools

import jax
import jax.numpy as jnp
from jax.experimental import pallas as pl
from jax.experimental.pallas import tpu as pltpu

_LANE = 128
_SUB = 16  # row-tile granularity: satisfies f32 (8,128) AND bf16 (16,128) packing
_TILE_BYTES = 2 * 1024 * 1024  # ~2 MiB per input tile; 2 inputs x 2 bufs = 8 MiB VMEM


def _cdiv(a, b):
    return -(-a // b)


def _max_trows(dtype):
    """Largest row-tile (multiple of _SUB) keeping ~2 MiB per input tile."""
    bytes_per = jnp.dtype(dtype).itemsize
    trows = _TILE_BYTES // (_LANE * bytes_per)
    return max(_SUB, (trows // _SUB) * _SUB)


def _choose_tiling(rows, dtype):
    """Pick (trows, num_blocks): big lane-dense tiles, even block count if possible."""
    if rows <= _SUB:
        return rows, 1  # single full-extent block (exempt from (8,128) divisibility)
    trows = min(_max_trows(dtype), (rows // _SUB) * _SUB)
    nb = _cdiv(rows, trows)
    if nb % 2:
        # v7x has 2 TensorCores; an even block count lets the "parallel" grid
        # axis shard evenly across them.  Shrink the tile slightly if that
        # actually yields an even count.
        trows_even = _cdiv(_cdiv(rows, nb + 1), _SUB) * _SUB
        if trows_even > 0 and _cdiv(rows, trows_even) % 2 == 0:
            trows = trows_even
    nb = _cdiv(rows, trows)
    return trows, nb


def _make_kl_partial_kernel(trows, rows):
    """Kernel computing a (1, 128) per-lane partial KL sum for one row tile."""
    needs_row_mask = (rows % trows) != 0  # last grid block extends past the array

    def kernel(o_ref, t_ref, out_ref):
        o = o_ref[...].astype(jnp.float32)
        t = t_ref[...].astype(jnp.float32)

        # PyTorch kl_div (xlogy-based): contribution is 0 where target == 0.
        # NOTE: jnp.where evaluates both branches; log(0) = -inf / NaN is
        # computed then selected away — do not "simplify" away the where.
        # TODO(synk): on v7x (3.2 TB/s HBM) the two f32 logs/elem may become
        # EUP-bound once bandwidth fixes land; measure before rewriting as
        # t * log(t / o) (a log and a recip are each one EUP push per vreg).
        pw = jnp.where(t > 0, t * (jnp.log(t) - jnp.log(o)), jnp.float32(0.0))

        if needs_row_mask:
            i = pl.program_id(0)
            is_last = i == pl.num_programs(0) - 1

            @pl.when(jnp.logical_not(is_last))
            def _():
                out_ref[...] = jnp.sum(pw, axis=0, keepdims=True)

            @pl.when(is_last)
            def _():
                # Rows past the end of the input in the final (partial) block
                # hold undefined data; zero them by global row index.  Any NaN
                # in those rows is discarded by the select.
                row = i * trows + jax.lax.broadcasted_iota(jnp.int32, pw.shape, 0)
                masked = jnp.where(row < rows, pw, jnp.float32(0.0))
                out_ref[...] = jnp.sum(masked, axis=0, keepdims=True)
        else:
            out_ref[...] = jnp.sum(pw, axis=0, keepdims=True)

    return kernel


def _pointwise_kl(o, t):
    o = o.astype(jnp.float32)
    t = t.astype(jnp.float32)
    return jnp.where(t > 0, t * (jnp.log(t) - jnp.log(o)), jnp.float32(0.0))


@jax.jit
def kl_loss(output, target):
    """Pallas equivalent of KLLoss().forward(output, target)."""
    assert output.shape == target.shape
    n_elems = output.size

    flat_o = output.reshape(-1)
    flat_t = target.reshape(-1)

    rows = n_elems // _LANE
    n_aligned = rows * _LANE
    tail = n_elems - n_aligned

    total = jnp.float32(0.0)

    if rows > 0:
        # Lane-aligned prefix, streamed through the Pallas kernel in its native
        # dtype (kernel upcasts per-tile).  No host-side pad copies.
        o2 = flat_o[:n_aligned].reshape(rows, _LANE)
        t2 = flat_t[:n_aligned].reshape(rows, _LANE)

        trows, num_blocks = _choose_tiling(rows, output.dtype)

        partials = pl.pallas_call(
            _make_kl_partial_kernel(trows, rows),
            out_shape=jax.ShapeDtypeStruct((num_blocks, 1, _LANE), jnp.float32),
            grid=(num_blocks,),
            in_specs=[
                pl.BlockSpec((trows, _LANE), lambda i: (i, 0)),
                pl.BlockSpec((trows, _LANE), lambda i: (i, 0)),
            ],
            # One (1, 128) per-lane partial-sum block per grid step; no carried
            # state across the grid, so the axis is truly "parallel".
            out_specs=pl.BlockSpec((None, 1, _LANE), lambda i: (i, 0, 0)),
            compiler_params=pltpu.CompilerParams(
                dimension_semantics=("parallel",),
            ),
        )(o2, t2)
        total = total + jnp.sum(partials)

    if tail:
        # <128-element ragged tail: trivial plain-jnp sum (fused by jit).
        total = total + jnp.sum(_pointwise_kl(flat_o[n_aligned:], flat_t[n_aligned:]))

    # 'mean' reduction over ALL elements.
    return total / jnp.float32(n_elems)


if __name__ == "__main__":
    key = jax.random.PRNGKey(0)
    k_o, k_t = jax.random.split(key)

    shape = (2, 4, 16, 16)  # (N, C, H, W)
    # `output` must be strictly positive (it is log()'d); `target` is a
    # non-negative probability-like tensor.
    output = jax.random.uniform(k_o, shape, jnp.float32, minval=0.05, maxval=1.0)
    target_logits = jax.random.uniform(k_t, shape, jnp.float32)
    target = jax.nn.softmax(
        target_logits.reshape(shape[0], -1), axis=-1
    ).reshape(shape)

    loss = kl_loss(output, target)
    jax.block_until_ready(loss)

    # Pure-JAX reference of the same semantics.
    ref = jnp.mean(
        jnp.where(target > 0, target * (jnp.log(target) - jnp.log(output)), 0.0)
    )
    assert jnp.allclose(loss, ref, rtol=1e-5, atol=1e-6), (loss, ref)

    print("KERNEL_OK")
</pallas_src>

<mosaic_0001>
module attributes {stable_mosaic.version = 11 : i64} {
  func.func @kernel(%arg0: i32, %arg1: memref<16x128xf32, #tpu.memory_space<vmem>>, %arg2: memref<16x128xf32, #tpu.memory_space<vmem>>, %arg3: memref<1x1x128xf32, #tpu.memory_space<vmem>>) attributes {dimension_semantics = [#tpu.dimension_semantics<parallel>], iteration_bounds = array<i64: 1>, scalar_prefetch = 0 : i64, scratch_operands = 0 : i64, tpu.core_type = #tpu.core_type<tc>, window_params = [{transform_indices = @transform_0, window_bounds = array<i64: 16, 128>}, {transform_indices = @transform_1, window_bounds = array<i64: 16, 128>}, {transform_indices = @transform_2, window_bounds = array<i64: 1, 1, 128>}]} {
    %c0 = arith.constant 0 : index
    %c0_0 = arith.constant 0 : index
    %0 = vector.load %arg1[%c0, %c0_0] : memref<16x128xf32, #tpu.memory_space<vmem>>, vector<16x128xf32>
    %c0_1 = arith.constant 0 : index
    %c0_2 = arith.constant 0 : index
    %1 = vector.load %arg2[%c0_1, %c0_2] : memref<16x128xf32, #tpu.memory_space<vmem>>, vector<16x128xf32>
    %cst = arith.constant 0.000000e+00 : f32
    %2 = vector.broadcast %cst : f32 to vector<16x128xf32>
    %3 = arith.cmpf ogt, %1, %2 : vector<16x128xf32>
    %4 = math.log %1 : vector<16x128xf32>
    %5 = math.log %0 : vector<16x128xf32>
    %6 = arith.subf %4, %5 : vector<16x128xf32>
    %7 = arith.mulf %1, %6 : vector<16x128xf32>
    %cst_3 = arith.constant 0.000000e+00 : f32
    %8 = vector.broadcast %cst_3 : f32 to vector<16x128xf32>
    %9 = arith.select %3, %7, %8 : vector<16x128xi1>, vector<16x128xf32>
    %cst_4 = arith.constant dense<0.000000e+00> : vector<128xf32>
    %10 = vector.multi_reduction <add>, %9, %cst_4 [0] : vector<16x128xf32> to vector<128xf32>
    %11 = vector.shape_cast %10 : vector<128xf32> to vector<1x128xf32>
    %c0_5 = arith.constant 0 : index
    %c0_6 = arith.constant 0 : index
    %c0_7 = arith.constant 0 : index
    %12 = vector.load %arg3[%c0_5, %c0_6, %c0_7] : memref<1x1x128xf32, #tpu.memory_space<vmem>>, vector<1x1x128xf32>
    %13 = vector.shape_cast %12 : vector<1x1x128xf32> to vector<1x128xf32>
    %14 = vector.shape_cast %11 : vector<1x128xf32> to vector<1x1x128xf32>
    tpu.vector_store %arg3[%c0_5, %c0_6, %c0_7], %14 {strides = array<i32>} : memref<1x1x128xf32, #tpu.memory_space<vmem>>, vector<1x1x128xf32>,
    return
  }
  func.func @transform_0(%arg0: i32) -> (i32, i32) {
    %c0_i32 = arith.constant 0 : i32
    %c0_i32_0 = arith.constant 0 : i32
    return %arg0, %c0_i32 : i32, i32
  }
  func.func @transform_1(%arg0: i32) -> (i32, i32) {
    %c0_i32 = arith.constant 0 : i32
    %c0_i32_0 = arith.constant 0 : i32
    return %arg0, %c0_i32 : i32, i32
  }
  func.func @transform_2(%arg0: i32) -> (i32, i32, i32) {
    %c0_i32 = arith.constant 0 : i32
    %c0_i32_0 = arith.constant 0 : i32
    %c0_i32_1 = arith.constant 0 : i32
    return %arg0, %c0_i32, %c0_i32_0 : i32, i32, i32
  }
}

</mosaic_0001>

<bundles_post_ra>
// kernel: kl_loss.1
= control target key start
LH: loop header
LB: loop body
LE: loop exit
PB: predicated region body
PF: predicated region fallthrough
CT: control target
= control target key end

     0   :  { %s81_s0 = inlined_call_operand.vmem [shape: f32[16,128], index: 0, kind: input, shape index: {}]   ;;  %s82_s1 = inlined_call_operand.vmem [shape: f32[16,128], index: 1, kind: input, shape index: {}]   ;;  %s83_s2 = inlined_call_operand.vmem [shape: f32[1,1,128], index: 2, kind: output, shape index: {}]  }
   0x1   :  { %v11_v0 = vld [vmem:[%s81_s0] sm:$0xff]  ;;  %v12_v2 = vld [vmem:[%s81_s0 + $0x8] sm:$0xff] }
   0x2   :  { %v13_v1 = vld [vmem:[%s82_s1] sm:$0xff]  ;;  %v14_v3 = vld [vmem:[%s82_s1 + $0x8] sm:$0xff] }
   0x3   :  { %43 = vlog2.f32 %v13_v1  ;;  %vm15_vm0 = vcmp.gt.f32.partialorder %v13_v1, 0.0  ;;  %vm16_vm1 = vcmp.gt.f32.partialorder %v14_v3, 0.0 }
   0x4   :  { %45 = vlog2.f32 %v14_v3 }
   0x5   :  { %47 = vlog2.f32 %v11_v0 }
   0x6   :  { %49 = vlog2.f32 %v12_v2 }
   0x9   :  { %v44_v4 = vpop.eup %43 }
   0xa   :  { %v46_v5 = vpop.eup %45  ;;  %v18_v6 = vmul.f32 0.6931472, %v44_v4 }
   0xb   :  { %v48_v7 = vpop.eup %47  ;;  %v20_v8 = vmul.f32 0.6931472, %v46_v5 }
   0xc   :  { %v50_v9 = vpop.eup %49  ;;  %v22_v10 = vmul.f32 0.6931472, %v48_v7 }
   0xd   :  { %v24_v11 = vmul.f32 0.6931472, %v50_v9 }
   0xe   :  { %v25_v12 = vsub.f32 %v18_v6, %v22_v10 }
   0xf   :  { %v26_v13 = vsub.f32 %v20_v8, %v24_v11 }
  0x10   :  { %v27_v14 = vmul.f32 %v25_v12, %v13_v1 }
  0x11   :  { %v28_v15 = vmul.f32 %v26_v13, %v14_v3 }
  0x12   :  { %v29_v16 = vsel %vm15_vm0, %v27_v14, 0.0 }
  0x13   :  { %v30_v17 = vsel %vm16_vm1, %v28_v15, 0.0 }
  0x14   :  { %v31_v18 = vadd.f32 %v30_v17, %v29_v16 }
  0x16   :  { %v32_v19 = vrot.slane %v31_v18, 4 }
  0x18   :  { %v33_v20 = vadd.f32 %v32_v19, %v31_v18 }
  0x1a   :  { %v34_v21 = vrot.slane %v33_v20, 2 }
  0x1c   :  { %v35_v22 = vadd.f32 %v34_v21, %v33_v20 }
  0x1e   :  { %v36_v23 = vrot.slane %v35_v22, 1 }
  0x20   :  { %v37_v24 = vadd.f32 %v36_v23, %v35_v22 }
  0x22   :  { %38 = vst [vmem:[%s83_s2] sm:$0x1] %v37_v24 }

</bundles_post_ra>
